<compile_context>
chip_gen: v5e
topology: v5e:2x2
jax: 0.10.0
libtpu: 0.0.40
codegen_flags: <defaults>
</compile_context>

<pallas_src>
import functools

import jax
import jax.numpy as jnp
from jax import lax
from jax.experimental import pallas as pl
from jax.experimental.pallas import tpu as pltpu

LANE = 128          # padded hidden width (full 128-lane vregs / MXU rows)
MAX_BLOCK_B = 2048  # cap on the batch tile; keeps per-step VMEM ~2.5 MiB


# ---------------------------------------------------------------------------
# Kernel
# ---------------------------------------------------------------------------
def policy_net_kernel(x_ref, w1_ref, b1_ref, w2_ref, wh_ref, out_ref, *,
                      action_dim, log_std_min, log_std_max):
    """Fused fc1+ReLU -> fc2+ReLU -> [mean | log_std] head.

    Weights arrive bf16 (MXU-native); activations are cast to the weight
    dtype just before each matmul; accumulation and epilogue stay f32.
    fc2 / head biases are folded into weight row `hidden` via the ones lane
    (h1[:, hidden] == h2[:, hidden] == 1.0), so only fc1 keeps a bias ref.
    """
    wdt = w1_ref.dtype

    # fc1 + bias + ReLU (hidden zero-padded to 128 lanes; padded lane
    # `hidden` carries a constant 1.0 used as the bias input downstream).
    h1 = jnp.dot(x_ref[...].astype(wdt), w1_ref[...],
                 preferred_element_type=jnp.float32) + b1_ref[...]
    h1 = jnp.maximum(h1, 0.0)

    # fc2 + ReLU (bias folded into w2 row `hidden`).
    h2 = jnp.dot(h1.astype(wdt), w2_ref[...],
                 preferred_element_type=jnp.float32)
    h2 = jnp.maximum(h2, 0.0)

    # Fused heads, narrow output: lanes [0, action_dim) -> mean (tanh),
    # lanes [action_dim, 2*action_dim) -> log_std (clamp).
    head = jnp.dot(h2.astype(wdt), wh_ref[...],
                   preferred_element_type=jnp.float32)
    col = lax.broadcasted_iota(jnp.int32, head.shape, 1)
    out_ref[...] = jnp.where(
        col < action_dim,
        jnp.tanh(head),
        jnp.clip(head, log_std_min, log_std_max),
    )


# ---------------------------------------------------------------------------
# Host-side wrapper
# ---------------------------------------------------------------------------
def policy_network_forward(state, packed, log_std_min=-20.0, log_std_max=2.0,
                           block_b=1024):
    """Runs PolicyNetwork.forward as one Pallas kernel.

    state:  [B, state_dim] float32
    packed: dict from pack_params() (padded / fused / bf16 weights)
    returns: (mean [B, action_dim], log_std [B, action_dim])
    """
    B, state_dim = state.shape
    action_dim = packed["action_dim"]
    head_lane = packed["w_head"].shape[1]   # == 2 * action_dim

    kernel = functools.partial(
        policy_net_kernel,
        action_dim=action_dim,
        log_std_min=float(log_std_min),
        log_std_max=float(log_std_max),
    )
    weights = (packed["w1"], packed["b1"], packed["w2"], packed["w_head"])

    bb = min(int(block_b), MAX_BLOCK_B)
    bb = max(8, bb - bb % 8)

    if B > bb:
        # Batch-tiled path: always >= 2 grid steps, so the "parallel" axis
        # shards across v7x's two TensorCores. B is padded host-side to a
        # multiple of the (rebalanced) tile -> cdiv grid, constant per-step
        # VMEM regardless of B. Weights stay VMEM-resident (index_map (0,0)).
        n_steps = -(-B // bb)                    # cdiv, >= 2
        bb = ((-(-B // n_steps)) + 7) // 8 * 8   # balance the last tile
        b_pad = n_steps * bb
        x_in = state if b_pad == B else jnp.pad(state, ((0, b_pad - B), (0, 0)))

        def resident(a):
            return pl.BlockSpec(a.shape, lambda i: (0, 0))

        fused = pl.pallas_call(
            kernel,
            out_shape=jax.ShapeDtypeStruct((b_pad, head_lane), jnp.float32),
            grid=(n_steps,),
            in_specs=[
                pl.BlockSpec((bb, state_dim), lambda i: (i, 0)),
                resident(packed["w1"]), resident(packed["b1"]),
                resident(packed["w2"]), resident(packed["w_head"]),
            ],
            out_specs=pl.BlockSpec((bb, head_lane), lambda i: (i, 0)),
            compiler_params=pltpu.CompilerParams(
                dimension_semantics=("parallel",)),
        )(x_in, *weights)
        fused = fused[:B]
    else:
        # Small-batch path: single invocation, everything VMEM-resident, no
        # grid machinery (launch/DMA-overhead bound at these shapes).
        vmem = pl.BlockSpec(memory_space=pltpu.MemorySpace.VMEM)
        fused = pl.pallas_call(
            kernel,
            out_shape=jax.ShapeDtypeStruct((B, head_lane), jnp.float32),
            in_specs=[vmem] * 5,
            out_specs=vmem,
        )(state, *weights)

    mean = fused[:, :action_dim]
    log_std = fused[:, action_dim:]
    return mean, log_std


# ---------------------------------------------------------------------------
# Parameter init / packing
# ---------------------------------------------------------------------------
def init_params(key, state_dim, action_dim, hidden_dim=64):
    """PyTorch nn.Linear-style init (uniform +-1/sqrt(fan_in)).
    Weights stored transposed as [in, out]; biases [1, out]."""
    def linear(k, fan_in, fan_out):
        kw, kb = jax.random.split(k)
        bound = 1.0 / jnp.sqrt(fan_in)
        w = jax.random.uniform(kw, (fan_in, fan_out), jnp.float32, -bound, bound)
        b = jax.random.uniform(kb, (1, fan_out), jnp.float32, -bound, bound)
        return w, b

    k1, k2, k3, k4 = jax.random.split(key, 4)
    w1, b1 = linear(k1, state_dim, hidden_dim)
    w2, b2 = linear(k2, hidden_dim, hidden_dim)
    wm, bm = linear(k3, hidden_dim, action_dim)
    ws, bs = linear(k4, hidden_dim, action_dim)
    return {"w1": w1, "b1": b1, "w2": w2, "b2": b2,
            "w_mean": wm, "b_mean": bm,
            "w_log_std": ws, "b_log_std": bs}


def pack_params(params, hidden_pad=LANE, weight_dtype=jnp.bfloat16):
    """Pad / fuse the PyTorch-style params for the kernel.

      * hidden zero-padded to 128 lanes; b1[hidden] = 1.0 turns padded lane
        `hidden` of h1 (and, via w2[hidden, hidden] = 1, of h2) into a
        constant 1.0, so fc2 / head biases ride as weight row `hidden`.
      * heads fused into one [128, 2*action_dim] weight: mean in lanes
        [0, action_dim), log_std in [action_dim, 2*action_dim) -> one MXU
        matmul, narrow writeback.
      * matmul weights cast to bf16 (f32 accumulation in the kernel);
        b1 kept f32 (added post-accumulation on the VPU).
    Zero-padded lanes stay exactly 0 through ReLU, so the math matches the
    unpadded reference up to bf16 operand rounding.
    """
    state_dim, hidden = params["w1"].shape
    action_dim = params["w_mean"].shape[1]
    head_lane = 2 * action_dim
    assert hidden < hidden_pad, "need one spare lane for the folded biases"

    w1 = jnp.zeros((state_dim, hidden_pad), jnp.float32)
    w1 = w1.at[:, :hidden].set(params["w1"])

    b1 = jnp.zeros((1, hidden_pad), jnp.float32)
    b1 = b1.at[:, :hidden].set(params["b1"])
    b1 = b1.at[0, hidden].set(1.0)                      # ones lane

    w2 = jnp.zeros((hidden_pad, hidden_pad), jnp.float32)
    w2 = w2.at[:hidden, :hidden].set(params["w2"])
    w2 = w2.at[hidden, :hidden].set(params["b2"][0])    # folded fc2 bias
    w2 = w2.at[hidden, hidden].set(1.0)                 # propagate ones lane

    wh = jnp.zeros((hidden_pad, head_lane), jnp.float32)
    wh = wh.at[:hidden, :action_dim].set(params["w_mean"])
    wh = wh.at[:hidden, action_dim:].set(params["w_log_std"])
    wh = wh.at[hidden, :action_dim].set(params["b_mean"][0])
    wh = wh.at[hidden, action_dim:].set(params["b_log_std"][0])

    return {"w1": w1.astype(weight_dtype), "b1": b1,
            "w2": w2.astype(weight_dtype), "w_head": wh.astype(weight_dtype),
            "action_dim": action_dim}


def reference_forward(state, params, log_std_min=-20.0, log_std_max=2.0):
    x = jnp.maximum(state @ params["w1"] + params["b1"], 0.0)
    x = jnp.maximum(x @ params["w2"] + params["b2"], 0.0)
    mean = jnp.tanh(x @ params["w_mean"] + params["b_mean"])
    log_std = jnp.clip(x @ params["w_log_std"] + params["b_log_std"],
                       log_std_min, log_std_max)
    return mean, log_std


if __name__ == "__main__":
    STATE_DIM, ACTION_DIM, HIDDEN_DIM = 16, 8, 64

    key = jax.random.PRNGKey(0)
    k_params, k_small, k_large = jax.random.split(key, 3)
    params = init_params(k_params, STATE_DIM, ACTION_DIM, HIDDEN_DIM)
    packed = pack_params(params)

    # --- small-batch path (single invocation, all-VMEM) ---
    B_small = 8
    state_s = jax.random.normal(k_small, (B_small, STATE_DIM), jnp.float32)
    mean_s, log_std_s = policy_network_forward(state_s, packed)
    jax.block_until_ready((mean_s, log_std_s))
    mean_ref_s, log_std_ref_s = reference_forward(state_s, params)
    assert mean_s.shape == (B_small, ACTION_DIM)
    assert log_std_s.shape == (B_small, ACTION_DIM)
    # bf16 MXU operands -> loosened tolerance vs. the f32 reference.
    assert jnp.allclose(mean_s, mean_ref_s, atol=5e-2), "mean mismatch (small)"
    assert jnp.allclose(log_std_s, log_std_ref_s, atol=5e-2), "log_std mismatch (small)"

    # --- batch-tiled path (cdiv grid + tail padding, >= 2 parallel steps) ---
    B_large = 2600   # deliberately NOT a multiple of the 1024 default tile
    state_l = jax.random.normal(k_large, (B_large, STATE_DIM), jnp.float32)
    mean_l, log_std_l = policy_network_forward(state_l, packed)
    jax.block_until_ready((mean_l, log_std_l))
    mean_ref_l, log_std_ref_l = reference_forward(state_l, params)
    assert mean_l.shape == (B_large, ACTION_DIM)
    assert log_std_l.shape == (B_large, ACTION_DIM)
    assert jnp.allclose(mean_l, mean_ref_l, atol=5e-2), "mean mismatch (large)"
    assert jnp.allclose(log_std_l, log_std_ref_l, atol=5e-2), "log_std mismatch (large)"

    print("KERNEL_OK")
</pallas_src>

<mosaic_0001>
module attributes {stable_mosaic.version = 11 : i64} {
  func.func @policy_net_kernel(%arg0: memref<8x16xf32, #tpu.memory_space<vmem>>, %arg1: memref<16x128xbf16, #tpu.memory_space<vmem>>, %arg2: memref<1x128xf32, #tpu.memory_space<vmem>>, %arg3: memref<128x128xbf16, #tpu.memory_space<vmem>>, %arg4: memref<128x16xbf16, #tpu.memory_space<vmem>>, %arg5: memref<8x16xf32, #tpu.memory_space<vmem>>) attributes {dimension_semantics = [], scalar_prefetch = 0 : i64, scratch_operands = 0 : i64, tpu.core_type = #tpu.core_type<tc>} {
    %c0 = arith.constant 0 : index
    %c0_0 = arith.constant 0 : index
    %0 = vector.load %arg0[%c0, %c0_0] : memref<8x16xf32, #tpu.memory_space<vmem>>, vector<8x16xf32>
    %1 = arith.truncf %0 : vector<8x16xf32> to vector<8x16xbf16>
    %c0_1 = arith.constant 0 : index
    %c0_2 = arith.constant 0 : index
    %2 = vector.load %arg1[%c0_1, %c0_2] : memref<16x128xbf16, #tpu.memory_space<vmem>>, vector<16x128xbf16>
    %cst = arith.constant dense<0.000000e+00> : vector<8x128xf32>
    %3 = tpu.matmul %1, %2, %cst {dimension_numbers = #tpu.dot_dimension_numbers<[1], [0], [0], [1], [0, 0, 1, 1], [], []>} : vector<8x16xbf16>, vector<16x128xbf16>, vector<8x128xf32> -> vector<8x128xf32>
    %c0_3 = arith.constant 0 : index
    %c0_4 = arith.constant 0 : index
    %4 = vector.load %arg2[%c0_3, %c0_4] : memref<1x128xf32, #tpu.memory_space<vmem>>, vector<1x128xf32>
    %5 = vector.broadcast %4 : vector<1x128xf32> to vector<8x128xf32>
    %6 = arith.addf %3, %5 : vector<8x128xf32>
    %cst_5 = arith.constant 0.000000e+00 : f32
    %7 = vector.broadcast %cst_5 : f32 to vector<8x128xf32>
    %8 = arith.maximumf %6, %7 : vector<8x128xf32>
    %9 = arith.truncf %8 : vector<8x128xf32> to vector<8x128xbf16>
    %c0_6 = arith.constant 0 : index
    %c0_7 = arith.constant 0 : index
    %10 = vector.load %arg3[%c0_6, %c0_7] : memref<128x128xbf16, #tpu.memory_space<vmem>>, vector<128x128xbf16>
    %cst_8 = arith.constant dense<0.000000e+00> : vector<8x128xf32>
    %11 = tpu.matmul %9, %10, %cst_8 {dimension_numbers = #tpu.dot_dimension_numbers<[1], [0], [0], [1], [0, 0, 1, 1], [], []>} : vector<8x128xbf16>, vector<128x128xbf16>, vector<8x128xf32> -> vector<8x128xf32>
    %cst_9 = arith.constant 0.000000e+00 : f32
    %12 = vector.broadcast %cst_9 : f32 to vector<8x128xf32>
    %13 = arith.maximumf %11, %12 : vector<8x128xf32>
    %14 = arith.truncf %13 : vector<8x128xf32> to vector<8x128xbf16>
    %c0_10 = arith.constant 0 : index
    %c0_11 = arith.constant 0 : index
    %15 = vector.load %arg4[%c0_10, %c0_11] : memref<128x16xbf16, #tpu.memory_space<vmem>>, vector<128x16xbf16>
    %cst_12 = arith.constant dense<0.000000e+00> : vector<8x16xf32>
    %16 = tpu.matmul %14, %15, %cst_12 {dimension_numbers = #tpu.dot_dimension_numbers<[1], [0], [0], [1], [0, 0, 1, 1], [], []>} : vector<8x128xbf16>, vector<128x16xbf16>, vector<8x16xf32> -> vector<8x16xf32>
    %17 = tpu.iota {dimensions = array<i32: 1>} : vector<8x16xi32>
    %c8_i32 = arith.constant 8 : i32
    %18 = vector.broadcast %c8_i32 : i32 to vector<8x16xi32>
    %19 = arith.cmpi slt, %17, %18 : vector<8x16xi32>
    %20 = math.tanh %16 : vector<8x16xf32>
    %cst_13 = arith.constant -2.000000e+01 : f32
    %cst_14 = arith.constant 2.000000e+00 : f32
    %21 = vector.broadcast %cst_13 : f32 to vector<8x16xf32>
    %22 = arith.maximumf %21, %16 : vector<8x16xf32>
    %23 = vector.broadcast %cst_14 : f32 to vector<8x16xf32>
    %24 = arith.minimumf %23, %22 : vector<8x16xf32>
    %25 = arith.select %19, %20, %24 : vector<8x16xi1>, vector<8x16xf32>
    %c0_15 = arith.constant 0 : index
    %c0_16 = arith.constant 0 : index
    %26 = vector.load %arg5[%c0_15, %c0_16] : memref<8x16xf32, #tpu.memory_space<vmem>>, vector<8x16xf32>
    tpu.vector_store %arg5[%c0_15, %c0_16], %25 {strides = array<i32>} : memref<8x16xf32, #tpu.memory_space<vmem>>, vector<8x16xf32>,
    return
  }
}

</mosaic_0001>

<bundles_post_ra>
// kernel: tpu_custom_call.1
= control target key start
LH: loop header
LB: loop body
LE: loop exit
PB: predicated region body
PF: predicated region fallthrough
CT: control target
= control target key end

     0   :  { %10 = vsyncpa [#allocation3], 0  ;;  %s493_s0 = inlined_call_operand.vmem [shape: f32[8,16], index: 0, kind: input, shape index: {}]   ;;  %s494_s1 = inlined_call_operand.hbm [shape: bf16[16,128], index: 1, kind: input, shape index: {}]   ;;  %s495_s2 = inlined_call_operand.vmem [shape: f32[1,128], index: 2, kind: input, shape index: {}]   ;;  %s496_s3 = inlined_call_operand.vmem [shape: bf16[128,128], index: 3, kind: input, shape index: {}]   ;;  %s497_s4 = inlined_call_operand.vmem [shape: bf16[128,16], index: 4, kind: input, shape index: {}]   ;;  %s498_s5 = inlined_call_operand.hbm [shape: f32[8,16], index: 5, kind: output, shape index: {}]  }
   0x1   :  { %11 = vsyncpa [#allocation4], 0  ;;  %s18_s20 = sshll.u32 %s494_s1, 4  ;;  %s397_s21 = smov [#allocation2]   ;;  %s19_s20 = int_to_ptr.hbm [resolvable:$true] %s18_s20 }
   0x2   :  { %s20_s22 = sshll.u32 %s397_s21, 4  ;;  %s398_s23 = smov 64   ;;  %s21_s22 = int_to_ptr.vmem [resolvable:$true] %s20_s22 }
   0x3   :  { %s399_s24 = smov 4  }
   0x4   :  { %26 = dma.hbm_to_vmem [thread:$0]  %s19_s20, 128, %s21_s22, [#allocation3], %s398_s23, %s398_s23, %s399_s24  }
   0x5   :  { %393 = dma.done.wait [#allocation3], 128  }
   0x6   :  { %394 = vsyncadd [#allocation3], 4294967168  ;;  %v321_v0 = vld [vmem:[#allocation2] sm:$0xff]  ;;  %v329_v2 = vld [vmem:[%s496_s3 + $0x38] sm:$0xff]  ;;  %vm52_vm0 = vcmask 130048   ;;  %v227_v29 = vlaneseq  ;;  %s242_s9 = sshll.u32 %s498_s5, 4  ;;  %s243_s9 = int_to_ptr.hbm [resolvable:$true] %s242_s9 }
   0x7   :  { %v38_v1 = vld [vmem:[%s493_s0] sm:$0xff]  ;;  %63 = vmatpush.bf16.msra.mxu0 %v321_v0  ;;  %135 = vmatpush.bf16.msra.mxu1 %v329_v2  ;;  %v328_v4 = vld [vmem:[%s496_s3 + $0x30] sm:$0xff]  ;;  %v327_v5 = vld [vmem:[%s496_s3 + $0x28] sm:$0xff] }
   0x8   :  { %v39_v3 = vpack.c.bf16 %v38_v1, %v38_v1  ;;  %v326_v6 = vld [vmem:[%s496_s3 + $0x20] sm:$0xff]  ;;  %v325_v7 = vld [vmem:[%s496_s3 + $0x18] sm:$0xff]  ;;  %v324_v8 = vld [vmem:[%s496_s3 + $0x10] sm:$0xff]  ;;  %v228_v31 = vand.u32 127, %v227_v29 }
   0x9   :  { %v323_v9 = vld [vmem:[%s496_s3 + $0x8] sm:$0xff]  ;;  %v322_v10 = vld [vmem:[%s496_s3] sm:$0xff]  ;;  %v337_v11 = vld [vmem:[%s497_s4 + $0x38] sm:$0xff] }
   0xa   :  { %256 = vmatmul.msk.bf16.vlgmr.msra.gmra.mxu0 %vm52_vm0, %v39_v3  ;;  %214 = vmatpush.bf16.msra.mxu2 %v337_v11  ;;  %v336_v12 = vld [vmem:[%s497_s4 + $0x30] sm:$0xff]  ;;  %v335_v13 = vld [vmem:[%s497_s4 + $0x28] sm:$0xff]  ;;  %v334_v14 = vld [vmem:[%s497_s4 + $0x20] sm:$0xff]  ;;  %vm229_vm1 = vcmp.lt.s32.totalorder %v228_v31, 8 }
   0xb   :  { %136 = vmatpush.bf16.msra.mxu1 %v328_v4  ;;  %v333_v15 = vld [vmem:[%s497_s4 + $0x18] sm:$0xff]  ;;  %v332_v16 = vld [vmem:[%s497_s4 + $0x10] sm:$0xff]  ;;  %v342_v17 = vld [vmem:[%s495_s2] ss:$0 sm:$0xff]  ;;  %s400_s2 = smov [#allocation5]  }
   0xc   :  { %v331_v18 = vld [vmem:[%s497_s4 + $0x8] sm:$0xff]  ;;  %v330_v24 = vld [vmem:[%s497_s4] sm:$0xff]  ;;  %s240_s0 = sshll.u32 %s400_s2, 4  ;;  %s241_s0 = int_to_ptr.vmem [resolvable:$true] %s240_s0 }
   0xe   :  { %215 = vmatpush.bf16.msra.mxu2 %v336_v12 }
   0xf   :  { %137 = vmatpush.bf16.msra.mxu1 %v327_v5 }
  0x12   :  { %216 = vmatpush.bf16.msra.mxu2 %v335_v13 }
  0x13   :  { %138 = vmatpush.bf16.msra.mxu1 %v326_v6 }
  0x16   :  { %217 = vmatpush.bf16.msra.mxu2 %v334_v14 }
  0x17   :  { %139 = vmatpush.bf16.msra.mxu1 %v325_v7 }
  0x1a   :  { %218 = vmatpush.bf16.msra.mxu2 %v333_v15 }
  0x1b   :  { %140 = vmatpush.bf16.msra.mxu1 %v324_v8 }
  0x1e   :  { %219 = vmatpush.bf16.msra.mxu2 %v332_v16 }
  0x1f   :  { %141 = vmatpush.bf16.msra.mxu1 %v323_v9 }
  0x22   :  { %220 = vmatpush.bf16.msra.mxu2 %v331_v18 }
  0x23   :  { %142 = vmatpush.bf16.msra.mxu1 %v322_v10 }
  0x26   :  { %221 = vmatpush.bf16.msra.mxu2 %v330_v24 }
  0x87   :  { %v65_v19 = vpop.f32.mrf.mxu0 }
  0x88   :  { %v66_v20 = vadd.f32 %v342_v17, %v65_v19 }
  0x8a   :  { %v69_v21 = vmax.f32 %v66_v20, 0.0 }
  0x8c   :  { %v70_v22 = vpack.c.bf16 %v69_v21, %v69_v21 }
  0x8e   :  { %143 = vmatmul.bf16.vlgmr.msra.gmra.mxu1 %v70_v22 }
  0x8f   :  { %v67_v23 = vpop.f32.mrf.mxu0 }
 0x10b   :  { %v144_v25 = vpop.f32.mrf.mxu1 }
 0x10c   :  { %v148_v26 = vmax.f32 %v144_v25, 0.0 }
 0x10e   :  { %v149_v27 = vpack.c.bf16 %v148_v26, %v148_v26 }
 0x110   :  { %222 = vmatmul.bf16.vlgmr.msra.gmra.mxu2 %v149_v27 }
 0x113   :  { %v146_v28 = vpop.f32.mrf.mxu1 }
 0x193   :  { %v223_v30 = vpop.f32.mrf.mxu2 }
 0x194   :  { %343 = vtanh.f32 %v223_v30  ;;  %v231_v32 = vmax.f32 %v223_v30, -20.0 }
 0x196   :  { %v232_v33 = vmin.f32 %v231_v32, 2.0 }
 0x19a   :  { %v344_v34 = vpop.eup %343 }
 0x19b   :  { %v225_v35 = vpop.f32.mrf.mxu2  ;;  %v233_v36 = vsel %vm229_vm1, %v344_v34, %v232_v33 }
 0x19c   :  { %234 = vst.msk [vmem:[#allocation5] sm:$0xff] %vm52_vm0, %v233_v36 }
 0x19d   :  { %245 = dma.vmem_to_hbm [thread:$0]  %s241_s0, 128, %s243_s9, [#allocation4]  }
 0x19e   :  { %395 = dma.done.wait [#allocation4], 128  }
 0x19f   :  { %396 = vsyncadd [#allocation4], 4294967168 }
 0x1a0   :  { %250 = vsyncpa [#allocation3], 1 }
 0x1a1   :  { %251 = vsyncpa [#allocation4], 1 }

</bundles_post_ra>
